<compile_context>
chip_gen: v7x
topology: tpu7x:2x2x1
jax: 0.10.0
libtpu: 0.0.40
codegen_flags: <defaults>
</compile_context>

<pallas_src>
import functools

import jax
import jax.numpy as jnp
from jax import lax
from jax.experimental import pallas as pl
from jax.experimental.pallas import tpu as pltpu


def _round_up(x, m):
    return (x + m - 1) // m * m


def _additive_attn_kernel(feat_dtype,
                          valid_ref,                       # (B,) int32 scalar-prefetch (SMEM)
                          qpg_ref,                         # (1, TQ//8, Hs, 8)  projected queries, grouped
                          kpt_ref,                         # (1, Hs, KBLK)      projected keys, H on sublanes
                          v_ref,                           # (1, KBLK, Dvp)     values tile
                          wv_ref,                          # (Hs, 1)            w_v column
                          out_ref,                         # (1, TQ, Dvp)       resident over K tiles
                          scores_ref,                      # (1, TQ, KBLK)      streamed per K tile
                          m_out_ref, l_out_ref,            # (1, TQ, 1) each    softmax stats
                          m_ref, l_ref, acc_ref):          # scratch: (TQ,1),(TQ,1),(TQ,Dvp)
    b = pl.program_id(0)
    kb = pl.program_id(2)
    n_kb = pl.num_programs(2)

    _, Hs, KBLK = kpt_ref.shape
    n_grp = qpg_ref.shape[1]                               # TQ // 8 row groups

    # ---- init (first K tile for this (batch, Q tile)) ----------------------
    @pl.when(kb == 0)
    def _init():
        m_ref[...] = jnp.full_like(m_ref, -1e30)
        l_ref[...] = jnp.zeros_like(l_ref)
        acc_ref[...] = jnp.zeros_like(acc_ref)

    kpt = kpt_ref[0]                                       # (Hs, KBLK) f32
    # Hoisted broadcasts (not re-emitted per loop iteration).
    wv_b = jnp.broadcast_to(wv_ref[...], (Hs, KBLK))       # (Hs, KBLK)
    vlen = valid_ref[b]
    kidx = kb * KBLK + lax.broadcasted_iota(jnp.int32, (1, KBLK), 1)
    kmask = kidx < vlen                                    # (1, KBLK)
    neg = jnp.float32(-1000000.0)

    # ---- additive scores, one query row at a time ---------------------------
    # Feature slab per row is only (Hs, KBLK); tanh count is proportional to
    # the real H.  Masked rows are written directly into the streamed scores
    # output block (no separate score scratch).
    def _row_group(g, carry):
        base = pl.multiple_of(g * 8, 8)
        for i in range(8):                                 # static -> static lane index into the q group
            qcol = qpg_ref[0, g, :, i:i + 1]               # (Hs, 1)
            feat = jnp.tanh((kpt + qcol).astype(feat_dtype)).astype(jnp.float32)
            srow = jnp.sum(feat * wv_b, axis=0, keepdims=True)   # (1, KBLK) sublane (XLU) reduce
            srow = jnp.where(kmask, srow, neg)
            scores_ref[0, pl.ds(base + i, 1), :] = srow
        return carry

    lax.fori_loop(0, n_grp, _row_group, 0, unroll=min(2, n_grp))

    # ---- online-softmax accumulation of attn @ values -----------------------
    s = scores_ref[0]                                      # (TQ, KBLK) masked scores
    m_prev = m_ref[...]
    m_new = jnp.maximum(m_prev, jnp.max(s, axis=-1, keepdims=True))
    alpha = jnp.exp(m_prev - m_new)
    p = jnp.exp(s - m_new)                                 # (TQ, KBLK)
    l_ref[...] = alpha * l_ref[...] + jnp.sum(p, axis=-1, keepdims=True)
    acc_ref[...] = alpha * acc_ref[...] + jnp.dot(
        p, v_ref[0], preferred_element_type=jnp.float32)   # (TQ, Dvp)
    m_ref[...] = m_new

    # ---- finalize (last K tile) ---------------------------------------------
    @pl.when(kb == n_kb - 1)
    def _finalize():
        inv_l = pl.reciprocal(l_ref[...], approx=True)     # EUP slot, nearly free
        out_ref[0] = (acc_ref[...] * inv_l).astype(out_ref.dtype)
        m_out_ref[0] = m_ref[...]
        l_out_ref[0] = l_ref[...]


@functools.partial(jax.jit, static_argnames=("q_block", "k_block", "feat_dtype"))
def additive_attention(queries, keys, values, valid_lens, W_q, W_k, w_v,
                       *, q_block=128, k_block=512, feat_dtype=jnp.float32):
    """queries (B,Q,Dq), keys (B,K,Dk), values (B,K,Dv), valid_lens (B,) int.
       W_q (H,Dq), W_k (H,Dk), w_v (1,H).  Returns (out (B,Q,Dv), attn (B,Q,K)).
       feat_dtype=jnp.bfloat16 enables bf16 tanh (recommended on v6e/v7x)."""
    B, Qn, Dq = queries.shape
    _, Kn, Dk = keys.shape
    _, _, Dv = values.shape
    H = W_q.shape[0]
    f32 = jnp.float32

    # Geometry: H on sublanes (pad to 8), K on lanes (pad to 128), Dv lane-dense.
    Hs = _round_up(H, 8)
    TQ = _round_up(min(int(q_block), _round_up(Qn, 8)), 8)
    Qp = _round_up(Qn, TQ)
    KBLK = _round_up(min(int(k_block), _round_up(Kn, 128)), 128)
    Kp = _round_up(Kn, KBLK)
    Dvp = _round_up(Dv, 128)

    # Tiny projection GEMMs + layout plumbing in the wrapper (pure XLA), so the
    # kernel gets pre-transposed operands and never pads Dq/Dk/H to 128 lanes.
    qp = jnp.einsum("bqd,hd->bqh", queries.astype(f32), W_q.astype(f32))
    kp = jnp.einsum("bkd,hd->bkh", keys.astype(f32), W_k.astype(f32))
    qp = jnp.pad(qp, ((0, 0), (0, Qp - Qn), (0, Hs - H)))
    kp = jnp.pad(kp, ((0, 0), (0, Kp - Kn), (0, Hs - H)))
    qpg = qp.reshape(B, Qp // 8, 8, Hs).transpose(0, 1, 3, 2)    # (B, Qp//8, Hs, 8)
    kpT = kp.transpose(0, 2, 1)                                   # (B, Hs, Kp)
    v_p = jnp.pad(values.astype(f32), ((0, 0), (0, Kp - Kn), (0, Dvp - Dv)))
    wvT = jnp.pad(w_v.astype(f32), ((0, 0), (0, Hs - H))).T       # (Hs, 1)
    vlen = valid_lens.astype(jnp.int32).reshape(B)

    n_qt = Qp // TQ
    n_kb = Kp // KBLK

    # Explicit VMEM budget (double-buffered blocks + scratch + slack), capped
    # at v7x's 64 MiB physical VMEM.
    def _tile_bytes(shape):
        s = list(shape)
        s[-1] = _round_up(s[-1], 128)
        if len(s) >= 2:
            s[-2] = _round_up(s[-2], 8)
        n = 1
        for d in s:
            n *= d
        return 4 * n

    block_bytes = (_tile_bytes((TQ // 8, Hs, 8)) + _tile_bytes((Hs, KBLK))
                   + _tile_bytes((KBLK, Dvp)) + _tile_bytes((Hs, 1))
                   + _tile_bytes((TQ, Dvp)) + _tile_bytes((TQ, KBLK))
                   + 2 * _tile_bytes((TQ, 1)))
    scratch_bytes = _tile_bytes((TQ, Dvp)) + 2 * _tile_bytes((TQ, 1))
    vmem_limit = int(min(max(2 * block_bytes + scratch_bytes + (8 << 20), 24 << 20),
                         64 << 20))

    grid_spec = pltpu.PrefetchScalarGridSpec(
        num_scalar_prefetch=1,
        grid=(B, n_qt, n_kb),
        in_specs=[
            pl.BlockSpec((1, TQ // 8, Hs, 8), lambda b, qt, kb, vl: (b, qt, 0, 0)),
            pl.BlockSpec((1, Hs, KBLK), lambda b, qt, kb, vl: (b, 0, kb)),
            pl.BlockSpec((1, KBLK, Dvp), lambda b, qt, kb, vl: (b, kb, 0)),
            pl.BlockSpec((Hs, 1), lambda b, qt, kb, vl: (0, 0)),
        ],
        out_specs=[
            pl.BlockSpec((1, TQ, Dvp), lambda b, qt, kb, vl: (b, qt, 0)),
            pl.BlockSpec((1, TQ, KBLK), lambda b, qt, kb, vl: (b, qt, kb)),   # streamed
            pl.BlockSpec((1, TQ, 1), lambda b, qt, kb, vl: (b, qt, 0)),
            pl.BlockSpec((1, TQ, 1), lambda b, qt, kb, vl: (b, qt, 0)),
        ],
        scratch_shapes=[
            pltpu.VMEM((TQ, 1), f32),       # running max
            pltpu.VMEM((TQ, 1), f32),       # running sum
            pltpu.VMEM((TQ, Dvp), f32),     # running attn @ values
        ],
    )

    cost = pl.CostEstimate(
        flops=int(2 * B * Qp * Kp * (Hs + Dvp)),
        transcendentals=int(B * Qp * Kp * (Hs + 2)),
        bytes_accessed=int(4 * (qpg.size + kpT.size + v_p.size + wvT.size
                                + B * Qp * Dvp + B * Qp * Kp + 2 * B * Qp)),
    )

    out_p, scores_p, m_p, l_p = pl.pallas_call(
        functools.partial(_additive_attn_kernel, feat_dtype),
        out_shape=(
            jax.ShapeDtypeStruct((B, Qp, Dvp), f32),
            jax.ShapeDtypeStruct((B, Qp, Kp), f32),
            jax.ShapeDtypeStruct((B, Qp, 1), f32),
            jax.ShapeDtypeStruct((B, Qp, 1), f32),
        ),
        grid_spec=grid_spec,
        compiler_params=pltpu.CompilerParams(
            dimension_semantics=("parallel", "parallel", "arbitrary"),
            vmem_limit_bytes=vmem_limit),
        cost_estimate=cost,
    )(vlen, qpg, kpT, v_p, wvT)

    # Trivial follow-up normalization of the streamed masked scores (kept out
    # of the hot kernel per review): softmax(scores) = exp(scores - m) / l.
    attn_p = jnp.exp(scores_p - m_p) / l_p
    return out_p[:, :Qn, :Dv], attn_p[:, :Qn, :Kn]


def _reference(queries, keys, values, valid_lens, W_q, W_k, w_v):
    qp = jnp.einsum("bqd,hd->bqh", queries, W_q)
    kp = jnp.einsum("bkd,hd->bkh", keys, W_k)
    feat = jnp.tanh(qp[:, :, None, :] + kp[:, None, :, :])
    scores = jnp.einsum("bqkh,h->bqk", feat, w_v[0])
    kidx = jnp.arange(scores.shape[-1])[None, None, :]
    scores = jnp.where(kidx < valid_lens[:, None, None], scores, -1000000.0)
    attn = jax.nn.softmax(scores, axis=-1)
    return jnp.einsum("bqk,bkv->bqv", attn, values), attn


if __name__ == "__main__":
    # Shapes implied by the module's example usage.
    B, Qn, Kn = 2, 1, 10
    query_size, key_size, num_hiddens, value_dim = 2, 2, 8, 4

    key = jax.random.PRNGKey(0)
    k1, k2, k3, k4, k5 = jax.random.split(key, 5)

    queries = jax.random.normal(k1, (B, Qn, query_size), dtype=jnp.float32)
    keys = jax.random.normal(k2, (B, Kn, key_size), dtype=jnp.float32)
    values = jnp.tile(
        jnp.arange(40, dtype=jnp.float32).reshape(1, 10, 4), (B, 1, 1))
    valid_lens = jnp.array([2, 6], dtype=jnp.int32)

    # Deterministic parameter init (nn.Linear weight layout, bias=False).
    W_q = jax.random.normal(k3, (num_hiddens, query_size), dtype=jnp.float32) * 0.5
    W_k = jax.random.normal(k4, (num_hiddens, key_size), dtype=jnp.float32) * 0.5
    w_v = jax.random.normal(k5, (1, num_hiddens), dtype=jnp.float32) * 0.5

    out, attn = additive_attention(queries, keys, values, valid_lens, W_q, W_k, w_v)
    out = jax.block_until_ready(out)
    attn = jax.block_until_ready(attn)

    ref_out, ref_attn = _reference(queries, keys, values, valid_lens, W_q, W_k, w_v)

    # attn is normalized with exact f32 ops from the kernel's scores/m/l.
    assert jnp.allclose(attn, ref_attn, rtol=1e-4, atol=1e-4), "attn mismatch"
    # out uses the EUP approximate reciprocal (pl.reciprocal approx=True), so a
    # slightly looser tolerance is used here.
    assert jnp.allclose(out, ref_out, rtol=2e-3, atol=2e-3), "output mismatch"
    print("KERNEL_OK")
</pallas_src>

<mosaic_0001>
module attributes {stable_mosaic.version = 11 : i64} {
  func.func @_additive_attn_kernel(%arg0: i32, %arg1: i32, %arg2: i32, %arg3: memref<2xi32, #tpu.memory_space<smem>>, %arg4: memref<1x1x8x8xf32, #tpu.memory_space<vmem>>, %arg5: memref<1x8x128xf32, #tpu.memory_space<vmem>>, %arg6: memref<1x128x128xf32, #tpu.memory_space<vmem>>, %arg7: memref<8x1xf32, #tpu.memory_space<vmem>>, %arg8: memref<1x8x128xf32, #tpu.memory_space<vmem>>, %arg9: memref<1x8x128xf32, #tpu.memory_space<vmem>>, %arg10: memref<1x8x1xf32, #tpu.memory_space<vmem>>, %arg11: memref<1x8x1xf32, #tpu.memory_space<vmem>>, %arg12: memref<8x1xf32, #tpu.memory_space<vmem>>, %arg13: memref<8x1xf32, #tpu.memory_space<vmem>>, %arg14: memref<8x128xf32, #tpu.memory_space<vmem>>) attributes {dimension_semantics = [#tpu.dimension_semantics<parallel>, #tpu.dimension_semantics<parallel>, #tpu.dimension_semantics<arbitrary>], iteration_bounds = array<i64: 2, 1, 1>, scalar_prefetch = 1 : i64, scratch_operands = 3 : i64, tpu.core_type = #tpu.core_type<tc>, window_params = [{transform_indices = @transform_0, window_bounds = array<i64: 1, 1, 8, 8>}, {transform_indices = @transform_1, window_bounds = array<i64: 1, 8, 128>}, {transform_indices = @transform_2, window_bounds = array<i64: 1, 128, 128>}, {pipeline_mode = #tpu.pipeline_mode<synchronous>, transform_indices = @transform_3, window_bounds = array<i64: 8, 1>}, {transform_indices = @transform_4, window_bounds = array<i64: 1, 8, 128>}, {transform_indices = @transform_5, window_bounds = array<i64: 1, 8, 128>}, {transform_indices = @transform_6, window_bounds = array<i64: 1, 8, 1>}, {transform_indices = @transform_7, window_bounds = array<i64: 1, 8, 1>}]} {
    %c0_i32 = arith.constant 0 : i32
    %0 = arith.cmpi eq, %arg2, %c0_i32 : i32
    %1 = arith.extui %0 : i1 to i32
    %c0_i32_0 = arith.constant 0 : i32
    %2 = arith.cmpi ne, %1, %c0_i32_0 : i32
    scf.if %2 {
      %cst_72 = arith.constant -1.000000e+30 : f32
      %175 = vector.broadcast %cst_72 : f32 to vector<8x1xf32>
      %c0_73 = arith.constant 0 : index
      %c0_74 = arith.constant 0 : index
      %176 = vector.load %arg12[%c0_73, %c0_74] : memref<8x1xf32, #tpu.memory_space<vmem>>, vector<8x1xf32>
      tpu.vector_store %arg12[%c0_73, %c0_74], %175 {strides = array<i32>} : memref<8x1xf32, #tpu.memory_space<vmem>>, vector<8x1xf32>,
      %cst_75 = arith.constant 0.000000e+00 : f32
      %177 = vector.broadcast %cst_75 : f32 to vector<8x1xf32>
      %c0_76 = arith.constant 0 : index
      %c0_77 = arith.constant 0 : index
      %178 = vector.load %arg13[%c0_76, %c0_77] : memref<8x1xf32, #tpu.memory_space<vmem>>, vector<8x1xf32>
      tpu.vector_store %arg13[%c0_76, %c0_77], %177 {strides = array<i32>} : memref<8x1xf32, #tpu.memory_space<vmem>>, vector<8x1xf32>,
      %cst_78 = arith.constant 0.000000e+00 : f32
      %179 = vector.broadcast %cst_78 : f32 to vector<8x128xf32>
      %c0_79 = arith.constant 0 : index
      %c0_80 = arith.constant 0 : index
      %180 = vector.load %arg14[%c0_79, %c0_80] : memref<8x128xf32, #tpu.memory_space<vmem>>, vector<8x128xf32>
      tpu.vector_store %arg14[%c0_79, %c0_80], %179 {strides = array<i32>} : memref<8x128xf32, #tpu.memory_space<vmem>>, vector<8x128xf32>,
    } else {
    }
    %c0 = arith.constant 0 : index
    %c0_1 = arith.constant 0 : index
    %c0_2 = arith.constant 0 : index
    %3 = vector.load %arg5[%c0, %c0_1, %c0_2] : memref<1x8x128xf32, #tpu.memory_space<vmem>>, vector<1x8x128xf32>
    %4 = vector.shape_cast %3 : vector<1x8x128xf32> to vector<8x128xf32>
    %c0_3 = arith.constant 0 : index
    %c0_4 = arith.constant 0 : index
    %5 = vector.load %arg7[%c0_3, %c0_4] : memref<8x1xf32, #tpu.memory_space<vmem>>, vector<8x1xf32>
    %6 = vector.shape_cast %5 : vector<8x1xf32> to vector<8x1xf32>
    %7 = vector.broadcast %6 : vector<8x1xf32> to vector<8x128xf32>
    %8 = arith.index_cast %arg0 : i32 to index
    %9 = memref.load %arg3[%8] : memref<2xi32, #tpu.memory_space<smem>>
    %c128_i32 = arith.constant 128 : i32
    %10 = arith.muli %arg2, %c128_i32 : i32
    %11 = tpu.iota {dimensions = array<i32: 1>} : vector<1x128xi32>
    %12 = vector.broadcast %10 : i32 to vector<1x128xi32>
    %13 = arith.addi %12, %11 : vector<1x128xi32>
    %14 = vector.broadcast %9 : i32 to vector<1x128xi32>
    %15 = arith.cmpi slt, %13, %14 : vector<1x128xi32>
    %cst = arith.constant -1.000000e+06 : f32
    %c0_i32_5 = arith.constant 0 : i32
    %c8_i32 = arith.constant 8 : i32
    %16 = arith.muli %c0_i32_5, %c8_i32 : i32
    %17 = tpu.assume_multiple %16, 8 : i32
    %c0_6 = arith.constant 0 : index
    %18 = arith.index_cast %c0_i32_5 : i32 to index
    %c0_7 = arith.constant 0 : index
    %c0_8 = arith.constant 0 : index
    %19 = vector.load %arg4[%c0_6, %18, %c0_7, %c0_8] : memref<1x1x8x8xf32, #tpu.memory_space<vmem>>, vector<1x1x8x1xf32>
    %20 = vector.shape_cast %19 : vector<1x1x8x1xf32> to vector<8x1xf32>
    %21 = vector.broadcast %20 : vector<8x1xf32> to vector<8x128xf32>
    %22 = arith.addf %4, %21 : vector<8x128xf32>
    %23 = math.tanh %22 : vector<8x128xf32>
    %24 = arith.mulf %23, %7 : vector<8x128xf32>
    %cst_9 = arith.constant dense<0.000000e+00> : vector<128xf32>
    %25 = vector.multi_reduction <add>, %24, %cst_9 [0] : vector<8x128xf32> to vector<128xf32>
    %26 = vector.shape_cast %25 : vector<128xf32> to vector<1x128xf32>
    %27 = vector.broadcast %cst : f32 to vector<1x128xf32>
    %28 = arith.select %15, %26, %27 : vector<1x128xi1>, vector<1x128xf32>
    %c0_i32_10 = arith.constant 0 : i32
    %29 = arith.addi %17, %c0_i32_10 : i32
    %c0_11 = arith.constant 0 : index
    %30 = arith.index_cast %29 : i32 to index
    %c0_12 = arith.constant 0 : index
    %31 = vector.load %arg9[%c0_11, %30, %c0_12] : memref<1x8x128xf32, #tpu.memory_space<vmem>>, vector<1x1x128xf32>
    %32 = vector.shape_cast %31 : vector<1x1x128xf32> to vector<1x128xf32>
    %33 = vector.shape_cast %28 : vector<1x128xf32> to vector<1x1x128xf32>
    tpu.vector_store %arg9[%c0_11, %30, %c0_12], %33 {strides = array<i32>} : memref<1x8x128xf32, #tpu.memory_space<vmem>>, vector<1x1x128xf32>,
    %c0_13 = arith.constant 0 : index
    %34 = arith.index_cast %c0_i32_5 : i32 to index
    %c0_14 = arith.constant 0 : index
    %c1 = arith.constant 1 : index
    %35 = vector.load %arg4[%c0_13, %34, %c0_14, %c1] : memref<1x1x8x8xf32, #tpu.memory_space<vmem>>, vector<1x1x8x1xf32>
    %36 = vector.shape_cast %35 : vector<1x1x8x1xf32> to vector<8x1xf32>
    %37 = vector.broadcast %36 : vector<8x1xf32> to vector<8x128xf32>
    %38 = arith.addf %4, %37 : vector<8x128xf32>
    %39 = math.tanh %38 : vector<8x128xf32>
    %40 = arith.mulf %39, %7 : vector<8x128xf32>
    %cst_15 = arith.constant dense<0.000000e+00> : vector<128xf32>
    %41 = vector.multi_reduction <add>, %40, %cst_15 [0] : vector<8x128xf32> to vector<128xf32>
    %42 = vector.shape_cast %41 : vector<128xf32> to vector<1x128xf32>
    %43 = vector.broadcast %cst : f32 to vector<1x128xf32>
    %44 = arith.select %15, %42, %43 : vector<1x128xi1>, vector<1x128xf32>
    %c1_i32 = arith.constant 1 : i32
    %45 = arith.addi %17, %c1_i32 : i32
    %c0_16 = arith.constant 0 : index
    %46 = arith.index_cast %45 : i32 to index
    %c0_17 = arith.constant 0 : index
    %47 = vector.load %arg9[%c0_16, %46, %c0_17] : memref<1x8x128xf32, #tpu.memory_space<vmem>>, vector<1x1x128xf32>
    %48 = vector.shape_cast %47 : vector<1x1x128xf32> to vector<1x128xf32>
    %49 = vector.shape_cast %44 : vector<1x128xf32> to vector<1x1x128xf32>
    tpu.vector_store %arg9[%c0_16, %46, %c0_17], %49 {strides = array<i32>} : memref<1x8x128xf32, #tpu.memory_space<vmem>>, vector<1x1x128xf32>,
    %c0_18 = arith.constant 0 : index
    %50 = arith.index_cast %c0_i32_5 : i32 to index
    %c0_19 = arith.constant 0 : index
    %c2 = arith.constant 2 : index
    %51 = vector.load %arg4[%c0_18, %50, %c0_19, %c2] : memref<1x1x8x8xf32, #tpu.memory_space<vmem>>, vector<1x1x8x1xf32>
    %52 = vector.shape_cast %51 : vector<1x1x8x1xf32> to vector<8x1xf32>
    %53 = vector.broadcast %52 : vector<8x1xf32> to vector<8x128xf32>
    %54 = arith.addf %4, %53 : vector<8x128xf32>
    %55 = math.tanh %54 : vector<8x128xf32>
    %56 = arith.mulf %55, %7 : vector<8x128xf32>
    %cst_20 = arith.constant dense<0.000000e+00> : vector<128xf32>
    %57 = vector.multi_reduction <add>, %56, %cst_20 [0] : vector<8x128xf32> to vector<128xf32>
    %58 = vector.shape_cast %57 : vector<128xf32> to vector<1x128xf32>
    %59 = vector.broadcast %cst : f32 to vector<1x128xf32>
    %60 = arith.select %15, %58, %59 : vector<1x128xi1>, vector<1x128xf32>
    %c2_i32 = arith.constant 2 : i32
    %61 = arith.addi %17, %c2_i32 : i32
    %c0_21 = arith.constant 0 : index
    %62 = arith.index_cast %61 : i32 to index
    %c0_22 = arith.constant 0 : index
    %63 = vector.load %arg9[%c0_21, %62, %c0_22] : memref<1x8x128xf32, #tpu.memory_space<vmem>>, vector<1x1x128xf32>
    %64 = vector.shape_cast %63 : vector<1x1x128xf32> to vector<1x128xf32>
    %65 = vector.shape_cast %60 : vector<1x128xf32> to vector<1x1x128xf32>
    tpu.vector_store %arg9[%c0_21, %62, %c0_22], %65 {strides = array<i32>} : memref<1x8x128xf32, #tpu.memory_space<vmem>>, vector<1x1x128xf32>,
    %c0_23 = arith.constant 0 : index
    %66 = arith.index_cast %c0_i32_5 : i32 to index
    %c0_24 = arith.constant 0 : index
    %c3 = arith.constant 3 : index
    %67 = vector.load %arg4[%c0_23, %66, %c0_24, %c3] : memref<1x1x8x8xf32, #tpu.memory_space<vmem>>, vector<1x1x8x1xf32>
    %68 = vector.shape_cast %67 : vector<1x1x8x1xf32> to vector<8x1xf32>
    %69 = vector.broadcast %68 : vector<8x1xf32> to vector<8x128xf32>
    %70 = arith.addf %4, %69 : vector<8x128xf32>
    %71 = math.tanh %70 : vector<8x128xf32>
    %72 = arith.mulf %71, %7 : vector<8x128xf32>
    %cst_25 = arith.constant dense<0.000000e+00> : vector<128xf32>
    %73 = vector.multi_reduction <add>, %72, %cst_25 [0] : vector<8x128xf32> to vector<128xf32>
    %74 = vector.shape_cast %73 : vector<128xf32> to vector<1x128xf32>
    %75 = vector.broadcast %cst : f32 to vector<1x128xf32>
    %76 = arith.select %15, %74, %75 : vector<1x128xi1>, vector<1x128xf32>
    %c3_i32 = arith.constant 3 : i32
    %77 = arith.addi %17, %c3_i32 : i32
    %c0_26 = arith.constant 0 : index
    %78 = arith.index_cast %77 : i32 to index
    %c0_27 = arith.constant 0 : index
    %79 = vector.load %arg9[%c0_26, %78, %c0_27] : memref<1x8x128xf32, #tpu.memory_space<vmem>>, vector<1x1x128xf32>
    %80 = vector.shape_cast %79 : vector<1x1x128xf32> to vector<1x128xf32>
    %81 = vector.shape_cast %76 : vector<1x128xf32> to vector<1x1x128xf32>
    tpu.vector_store %arg9[%c0_26, %78, %c0_27], %81 {strides = array<i32>} : memref<1x8x128xf32, #tpu.memory_space<vmem>>, vector<1x1x128xf32>,
    %c0_28 = arith.constant 0 : index
    %82 = arith.index_cast %c0_i32_5 : i32 to index
    %c0_29 = arith.constant 0 : index
    %c4 = arith.constant 4 : index
    %83 = vector.load %arg4[%c0_28, %82, %c0_29, %c4] : memref<1x1x8x8xf32, #tpu.memory_space<vmem>>, vector<1x1x8x1xf32>
    %84 = vector.shape_cast %83 : vector<1x1x8x1xf32> to vector<8x1xf32>
    %85 = vector.broadcast %84 : vector<8x1xf32> to vector<8x128xf32>
    %86 = arith.addf %4, %85 : vector<8x128xf32>
    %87 = math.tanh %86 : vector<8x128xf32>
    %88 = arith.mulf %87, %7 : vector<8x128xf32>
    %cst_30 = arith.constant dense<0.000000e+00> : vector<128xf32>
    %89 = vector.multi_reduction <add>, %88, %cst_30 [0] : vector<8x128xf32> to vector<128xf32>
    %90 = vector.shape_cast %89 : vector<128xf32> to vector<1x128xf32>
    %91 = vector.broadcast %cst : f32 to vector<1x128xf32>
    %92 = arith.select %15, %90, %91 : vector<1x128xi1>, vector<1x128xf32>
    %c4_i32 = arith.constant 4 : i32
    %93 = arith.addi %17, %c4_i32 : i32
    %c0_31 = arith.constant 0 : index
    %94 = arith.index_cast %93 : i32 to index
    %c0_32 = arith.constant 0 : index
    %95 = vector.load %arg9[%c0_31, %94, %c0_32] : memref<1x8x128xf32, #tpu.memory_space<vmem>>, vector<1x1x128xf32>
    %96 = vector.shape_cast %95 : vector<1x1x128xf32> to vector<1x128xf32>
    %97 = vector.shape_cast %92 : vector<1x128xf32> to vector<1x1x128xf32>
    tpu.vector_store %arg9[%c0_31, %94, %c0_32], %97 {strides = array<i32>} : memref<1x8x128xf32, #tpu.memory_space<vmem>>, vector<1x1x128xf32>,
    %c0_33 = arith.constant 0 : index
    %98 = arith.index_cast %c0_i32_5 : i32 to index
    %c0_34 = arith.constant 0 : index
    %c5 = arith.constant 5 : index
    %99 = vector.load %arg4[%c0_33, %98, %c0_34, %c5] : memref<1x1x8x8xf32, #tpu.memory_space<vmem>>, vector<1x1x8x1xf32>
    %100 = vector.shape_cast %99 : vector<1x1x8x1xf32> to vector<8x1xf32>
    %101 = vector.broadcast %100 : vector<8x1xf32> to vector<8x128xf32>
    %102 = arith.addf %4, %101 : vector<8x128xf32>
    %103 = math.tanh %102 : vector<8x128xf32>
    %104 = arith.mulf %103, %7 : vector<8x128xf32>
    %cst_35 = arith.constant dense<0.000000e+00> : vector<128xf32>
    %105 = vector.multi_reduction <add>, %104, %cst_35 [0] : vector<8x128xf32> to vector<128xf32>
    %106 = vector.shape_cast %105 : vector<128xf32> to vector<1x128xf32>
    %107 = vector.broadcast %cst : f32 to vector<1x128xf32>
    %108 = arith.select %15, %106, %107 : vector<1x128xi1>, vector<1x128xf32>
    %c5_i32 = arith.constant 5 : i32
    %109 = arith.addi %17, %c5_i32 : i32
    %c0_36 = arith.constant 0 : index
    %110 = arith.index_cast %109 : i32 to index
    %c0_37 = arith.constant 0 : index
    %111 = vector.load %arg9[%c0_36, %110, %c0_37] : memref<1x8x128xf32, #tpu.memory_space<vmem>>, vector<1x1x128xf32>
    %112 = vector.shape_cast %111 : vector<1x1x128xf32> to vector<1x128xf32>
    %113 = vector.shape_cast %108 : vector<1x128xf32> to vector<1x1x128xf32>
    tpu.vector_store %arg9[%c0_36, %110, %c0_37], %113 {strides = array<i32>} : memref<1x8x128xf32, #tpu.memory_space<vmem>>, vector<1x1x128xf32>,
    %c0_38 = arith.constant 0 : index
    %114 = arith.index_cast %c0_i32_5 : i32 to index
    %c0_39 = arith.constant 0 : index
    %c6 = arith.constant 6 : index
    %115 = vector.load %arg4[%c0_38, %114, %c0_39, %c6] : memref<1x1x8x8xf32, #tpu.memory_space<vmem>>, vector<1x1x8x1xf32>
    %116 = vector.shape_cast %115 : vector<1x1x8x1xf32> to vector<8x1xf32>
    %117 = vector.broadcast %116 : vector<8x1xf32> to vector<8x128xf32>
    %118 = arith.addf %4, %117 : vector<8x128xf32>
    %119 = math.tanh %118 : vector<8x128xf32>
    %120 = arith.mulf %119, %7 : vector<8x128xf32>
    %cst_40 = arith.constant dense<0.000000e+00> : vector<128xf32>
    %121 = vector.multi_reduction <add>, %120, %cst_40 [0] : vector<8x128xf32> to vector<128xf32>
    %122 = vector.shape_cast %121 : vector<128xf32> to vector<1x128xf32>
    %123 = vector.broadcast %cst : f32 to vector<1x128xf32>
    %124 = arith.select %15, %122, %123 : vector<1x128xi1>, vector<1x128xf32>
    %c6_i32 = arith.constant 6 : i32
    %125 = arith.addi %17, %c6_i32 : i32
    %c0_41 = arith.constant 0 : index
    %126 = arith.index_cast %125 : i32 to index
    %c0_42 = arith.constant 0 : index
    %127 = vector.load %arg9[%c0_41, %126, %c0_42] : memref<1x8x128xf32, #tpu.memory_space<vmem>>, vector<1x1x128xf32>
    %128 = vector.shape_cast %127 : vector<1x1x128xf32> to vector<1x128xf32>
    %129 = vector.shape_cast %124 : vector<1x128xf32> to vector<1x1x128xf32>
    tpu.vector_store %arg9[%c0_41, %126, %c0_42], %129 {strides = array<i32>} : memref<1x8x128xf32, #tpu.memory_space<vmem>>, vector<1x1x128xf32>,
    %c0_43 = arith.constant 0 : index
    %130 = arith.index_cast %c0_i32_5 : i32 to index
    %c0_44 = arith.constant 0 : index
    %c7 = arith.constant 7 : index
    %131 = vector.load %arg4[%c0_43, %130, %c0_44, %c7] : memref<1x1x8x8xf32, #tpu.memory_space<vmem>>, vector<1x1x8x1xf32>
    %132 = vector.shape_cast %131 : vector<1x1x8x1xf32> to vector<8x1xf32>
    %133 = vector.broadcast %132 : vector<8x1xf32> to vector<8x128xf32>
    %134 = arith.addf %4, %133 : vector<8x128xf32>
    %135 = math.tanh %134 : vector<8x128xf32>
    %136 = arith.mulf %135, %7 : vector<8x128xf32>
    %cst_45 = arith.constant dense<0.000000e+00> : vector<128xf32>
    %137 = vector.multi_reduction <add>, %136, %cst_45 [0] : vector<8x128xf32> to vector<128xf32>
    %138 = vector.shape_cast %137 : vector<128xf32> to vector<1x128xf32>
    %139 = vector.broadcast %cst : f32 to vector<1x128xf32>
    %140 = arith.select %15, %138, %139 : vector<1x128xi1>, vector<1x128xf32>
    %c7_i32 = arith.constant 7 : i32
    %141 = arith.addi %17, %c7_i32 : i32
    %c0_46 = arith.constant 0 : index
    %142 = arith.index_cast %141 : i32 to index
    %c0_47 = arith.constant 0 : index
    %143 = vector.load %arg9[%c0_46, %142, %c0_47] : memref<1x8x128xf32, #tpu.memory_space<vmem>>, vector<1x1x128xf32>
    %144 = vector.shape_cast %143 : vector<1x1x128xf32> to vector<1x128xf32>
    %145 = vector.shape_cast %140 : vector<1x128xf32> to vector<1x1x128xf32>
    tpu.vector_store %arg9[%c0_46, %142, %c0_47], %145 {strides = array<i32>} : memref<1x8x128xf32, #tpu.memory_space<vmem>>, vector<1x1x128xf32>,
    %c1_i32_48 = arith.constant 1 : i32
    %c0_49 = arith.constant 0 : index
    %c0_50 = arith.constant 0 : index
    %c0_51 = arith.constant 0 : index
    %146 = vector.load %arg9[%c0_49, %c0_50, %c0_51] : memref<1x8x128xf32, #tpu.memory_space<vmem>>, vector<1x8x128xf32>
    %147 = vector.shape_cast %146 : vector<1x8x128xf32> to vector<8x128xf32>
    %c0_52 = arith.constant 0 : index
    %c0_53 = arith.constant 0 : index
    %148 = vector.load %arg12[%c0_52, %c0_53] : memref<8x1xf32, #tpu.memory_space<vmem>>, vector<8x1xf32>
    %cst_54 = arith.constant dense<0xFF800000> : vector<8xf32>
    %149 = vector.multi_reduction <maximumf>, %147, %cst_54 [1] : vector<8x128xf32> to vector<8xf32>
    %150 = vector.shape_cast %149 : vector<8xf32> to vector<8x1xf32>
    %151 = arith.maximumf %148, %150 : vector<8x1xf32>
    %152 = arith.subf %148, %151 : vector<8x1xf32>
    %153 = math.exp %152 : vector<8x1xf32>
    %154 = vector.broadcast %151 : vector<8x1xf32> to vector<8x128xf32>
    %155 = arith.subf %147, %154 : vector<8x128xf32>
    %156 = math.exp %155 : vector<8x128xf32>
    %c0_55 = arith.constant 0 : index
    %c0_56 = arith.constant 0 : index
    %157 = vector.load %arg13[%c0_55, %c0_56] : memref<8x1xf32, #tpu.memory_space<vmem>>, vector<8x1xf32>
    %158 = arith.mulf %153, %157 : vector<8x1xf32>
    %cst_57 = arith.constant dense<0.000000e+00> : vector<8xf32>
    %159 = vector.multi_reduction <add>, %156, %cst_57 [1] : vector<8x128xf32> to vector<8xf32>
    %160 = vector.shape_cast %159 : vector<8xf32> to vector<8x1xf32>
    %161 = arith.addf %158, %160 : vector<8x1xf32>
    %c0_58 = arith.constant 0 : index
    %c0_59 = arith.constant 0 : index
    %162 = vector.load %arg13[%c0_58, %c0_59] : memref<8x1xf32, #tpu.memory_space<vmem>>, vector<8x1xf32>
    tpu.vector_store %arg13[%c0_58, %c0_59], %161 {strides = array<i32>} : memref<8x1xf32, #tpu.memory_space<vmem>>, vector<8x1xf32>,
    %c0_60 = arith.constant 0 : index
    %c0_61 = arith.constant 0 : index
    %163 = vector.load %arg14[%c0_60, %c0_61] : memref<8x128xf32, #tpu.memory_space<vmem>>, vector<8x128xf32>
    %164 = vector.broadcast %153 : vector<8x1xf32> to vector<8x128xf32>
    %165 = arith.mulf %164, %163 : vector<8x128xf32>
    %c0_62 = arith.constant 0 : index
    %c0_63 = arith.constant 0 : index
    %c0_64 = arith.constant 0 : index
    %166 = vector.load %arg6[%c0_62, %c0_63, %c0_64] : memref<1x128x128xf32, #tpu.memory_space<vmem>>, vector<1x128x128xf32>
    %167 = vector.shape_cast %166 : vector<1x128x128xf32> to vector<128x128xf32>
    %cst_65 = arith.constant dense<0.000000e+00> : vector<8x128xf32>
    %168 = tpu.matmul %156, %167, %cst_65 {dimension_numbers = #tpu.dot_dimension_numbers<[1], [0], [0], [1], [0, 0, 1, 1], [], []>} : vector<8x128xf32>, vector<128x128xf32>, vector<8x128xf32> -> vector<8x128xf32>
    %169 = arith.addf %165, %168 : vector<8x128xf32>
    %c0_66 = arith.constant 0 : index
    %c0_67 = arith.constant 0 : index
    %170 = vector.load %arg14[%c0_66, %c0_67] : memref<8x128xf32, #tpu.memory_space<vmem>>, vector<8x128xf32>
    tpu.vector_store %arg14[%c0_66, %c0_67], %169 {strides = array<i32>} : memref<8x128xf32, #tpu.memory_space<vmem>>, vector<8x128xf32>,
    %c0_68 = arith.constant 0 : index
    %c0_69 = arith.constant 0 : index
    %171 = vector.load %arg12[%c0_68, %c0_69] : memref<8x1xf32, #tpu.memory_space<vmem>>, vector<8x1xf32>
    tpu.vector_store %arg12[%c0_68, %c0_69], %151 {strides = array<i32>} : memref<8x1xf32, #tpu.memory_space<vmem>>, vector<8x1xf32>,
    %c0_i32_70 = arith.constant 0 : i32
    %172 = arith.cmpi eq, %arg2, %c0_i32_70 : i32
    %173 = arith.extui %172 : i1 to i32
    %c0_i32_71 = arith.constant 0 : i32
    %174 = arith.cmpi ne, %173, %c0_i32_71 : i32
    scf.if %174 {
      %c0_72 = arith.constant 0 : index
      %c0_73 = arith.constant 0 : index
      %175 = vector.load %arg13[%c0_72, %c0_73] : memref<8x1xf32, #tpu.memory_space<vmem>>, vector<8x1xf32>
      %176 = tpu.reciprocal %175 {approx = true} : vector<8x1xf32> -> vector<8x1xf32>
      %c0_74 = arith.constant 0 : index
      %c0_75 = arith.constant 0 : index
      %177 = vector.load %arg14[%c0_74, %c0_75] : memref<8x128xf32, #tpu.memory_space<vmem>>, vector<8x128xf32>
      %178 = vector.broadcast %176 : vector<8x1xf32> to vector<8x128xf32>
      %179 = arith.mulf %177, %178 : vector<8x128xf32>
      %c0_76 = arith.constant 0 : index
      %c0_77 = arith.constant 0 : index
      %c0_78 = arith.constant 0 : index
      %180 = vector.load %arg8[%c0_76, %c0_77, %c0_78] : memref<1x8x128xf32, #tpu.memory_space<vmem>>, vector<1x8x128xf32>
      %181 = vector.shape_cast %180 : vector<1x8x128xf32> to vector<8x128xf32>
      %182 = vector.shape_cast %179 : vector<8x128xf32> to vector<1x8x128xf32>
      tpu.vector_store %arg8[%c0_76, %c0_77, %c0_78], %182 {strides = array<i32>} : memref<1x8x128xf32, #tpu.memory_space<vmem>>, vector<1x8x128xf32>,
      %c0_79 = arith.constant 0 : index
      %c0_80 = arith.constant 0 : index
      %183 = vector.load %arg12[%c0_79, %c0_80] : memref<8x1xf32, #tpu.memory_space<vmem>>, vector<8x1xf32>
      %c0_81 = arith.constant 0 : index
      %c0_82 = arith.constant 0 : index
      %c0_83 = arith.constant 0 : index
      %184 = vector.load %arg10[%c0_81, %c0_82, %c0_83] : memref<1x8x1xf32, #tpu.memory_space<vmem>>, vector<1x8x1xf32>
      %185 = vector.shape_cast %184 : vector<1x8x1xf32> to vector<8x1xf32>
      %186 = vector.shape_cast %183 : vector<8x1xf32> to vector<1x8x1xf32>
      tpu.vector_store %arg10[%c0_81, %c0_82, %c0_83], %186 {strides = array<i32>} : memref<1x8x1xf32, #tpu.memory_space<vmem>>, vector<1x8x1xf32>,
      %c0_84 = arith.constant 0 : index
      %c0_85 = arith.constant 0 : index
      %187 = vector.load %arg13[%c0_84, %c0_85] : memref<8x1xf32, #tpu.memory_space<vmem>>, vector<8x1xf32>
      %c0_86 = arith.constant 0 : index
      %c0_87 = arith.constant 0 : index
      %c0_88 = arith.constant 0 : index
      %188 = vector.load %arg11[%c0_86, %c0_87, %c0_88] : memref<1x8x1xf32, #tpu.memory_space<vmem>>, vector<1x8x1xf32>
      %189 = vector.shape_cast %188 : vector<1x8x1xf32> to vector<8x1xf32>
      %190 = vector.shape_cast %187 : vector<8x1xf32> to vector<1x8x1xf32>
      tpu.vector_store %arg11[%c0_86, %c0_87, %c0_88], %190 {strides = array<i32>} : memref<1x8x1xf32, #tpu.memory_space<vmem>>, vector<1x8x1xf32>,
    } else {
    }
    return
  }
  func.func @transform_0(%arg0: i32, %arg1: i32, %arg2: i32, %arg3: memref<2xi32, #tpu.memory_space<smem>>) -> (i32, i32, i32, i32) {
    %c0_i32 = arith.constant 0 : i32
    %c0_i32_0 = arith.constant 0 : i32
    %c0_i32_1 = arith.constant 0 : i32
    return %arg0, %arg1, %c0_i32, %c0_i32_0 : i32, i32, i32, i32
  }
  func.func @transform_1(%arg0: i32, %arg1: i32, %arg2: i32, %arg3: memref<2xi32, #tpu.memory_space<smem>>) -> (i32, i32, i32) {
    %c0_i32 = arith.constant 0 : i32
    %c0_i32_0 = arith.constant 0 : i32
    return %arg0, %c0_i32, %arg2 : i32, i32, i32
  }
  func.func @transform_2(%arg0: i32, %arg1: i32, %arg2: i32, %arg3: memref<2xi32, #tpu.memory_space<smem>>) -> (i32, i32, i32) {
    %c0_i32 = arith.constant 0 : i32
    %c0_i32_0 = arith.constant 0 : i32
    return %arg0, %arg2, %c0_i32 : i32, i32, i32
  }
  func.func @transform_3(%arg0: i32, %arg1: i32, %arg2: i32, %arg3: memref<2xi32, #tpu.memory_space<smem>>) -> (i32, i32) {
    %c0_i32 = arith.constant 0 : i32
    %c0_i32_0 = arith.constant 0 : i32
    %c0_i32_1 = arith.constant 0 : i32
    return %c0_i32, %c0_i32_0 : i32, i32
  }
  func.func @transform_4(%arg0: i32, %arg1: i32, %arg2: i32, %arg3: memref<2xi32, #tpu.memory_space<smem>>) -> (i32, i32, i32) {
    %c0_i32 = arith.constant 0 : i32
    %c0_i32_0 = arith.constant 0 : i32
    return %arg0, %arg1, %c0_i32 : i32, i32, i32
  }
  func.func @transform_5(%arg0: i32, %arg1: i32, %arg2: i32, %arg3: memref<2xi32, #tpu.memory_space<smem>>) -> (i32, i32, i32) {
    %c0_i32 = arith.constant 0 : i32
    return %arg0, %arg1, %arg2 : i32, i32, i32
  }
  func.func @transform_6(%arg0: i32, %arg1: i32, %arg2: i32, %arg3: memref<2xi32, #tpu.memory_space<smem>>) -> (i32, i32, i32) {
    %c0_i32 = arith.constant 0 : i32
    %c0_i32_0 = arith.constant 0 : i32
    return %arg0, %arg1, %c0_i32 : i32, i32, i32
  }
  func.func @transform_7(%arg0: i32, %arg1: i32, %arg2: i32, %arg3: memref<2xi32, #tpu.memory_space<smem>>) -> (i32, i32, i32) {
    %c0_i32 = arith.constant 0 : i32
    %c0_i32_0 = arith.constant 0 : i32
    return %arg0, %arg1, %c0_i32 : i32, i32, i32
  }
}

</mosaic_0001>

<bundles_post_ra>
// kernel: additive_attention.1
= control target key start
LH: loop header
LB: loop body
LE: loop exit
PB: predicated region body
PF: predicated region fallthrough
CT: control target
= control target key end

     0   :  { %s1412_s0 = inlined_call_operand.vmem [shape: s32[2], index: 0, kind: input, shape index: {}]   ;;  %s1413_s1 = inlined_call_operand.vmem [shape: f32[2,1,8,8], index: 1, kind: input, shape index: {}]   ;;  %s1414_s2 = inlined_call_operand.vmem [shape: f32[2,8,128], index: 2, kind: input, shape index: {}]   ;;  %s1415_s3 = inlined_call_operand.vmem [shape: f32[2,128,128], index: 3, kind: input, shape index: {}]   ;;  %s1416_s4 = inlined_call_operand.vmem [shape: f32[8,1], index: 4, kind: input, shape index: {}]   ;;  %s1417_s5 = inlined_call_operand.vmem [shape: f32[2,8,128], index: 5, kind: output, shape index: {0}]   ;;  %s1418_s6 = inlined_call_operand.vmem [shape: f32[2,8,128], index: 6, kind: output, shape index: {1}]   ;;  %s1419_s7 = inlined_call_operand.vmem [shape: f32[2,8,1], index: 7, kind: output, shape index: {2}]   ;;  %s1420_s8 = inlined_call_operand.vmem [shape: f32[2,8,1], index: 8, kind: output, shape index: {3}]  }
   0x1   :  { %s14_s29 = sshll.u32 %s1412_s0, 4  ;;  %s15_s29 = int_to_ptr.vmem [resolvable:$true] %s14_s29 }
   0x2   :  { %s1173_s30 = scalar_lea.vmem %s15_s29, 16  ;;  %p1178_p1 = scmp.lt.s32.totalorder %s15_s29, %s15_s29 }
   0x3   :  { %p1174_p0 = scmp.ne.s32.totalorder %s15_s29, %s1173_s30  ;;  %p1179_p2 = scmp.lt.s32.totalorder %s1173_s30, %s1173_s30 }
   0x5   :  { %p1180_p3 = por %p1179_p2, %p1178_p1 }
   0x7   :  { %p1181_p4 = pnand %p1180_p3, %p1174_p0 }
   0x9   :  { %1184 = shalt.err (!%p1181_p4)  }
   0xa   :  { %s1211_s9 = smov [#allocation6]  }
   0xb   :  { %17 = dma.vmem_to_smem %s15_s29, 16, %s1211_s9, [#allocation5] }
   0xc   :  { %1197 = dma.done.wait [#allocation5], 16 }
   0xd   :  { %1198 = vsyncadd [#allocation5], 4294967280 }
   0xe   :  { %19 = sfence }
   0xf   :  { %s1272_s10 = smov 0   ;;  %s1274_s11 = smov 0  }
  0x10   :  { %s1276_s12 = smov 0  }
  0x11 LB: > { %s44_s0 = sadd.s32 1, %s1205_s11  ;;  %p1009_p5 = scmp.ge.s32.totalorder %s1209_s12, 1  ;;  %s1209_s12 = sphi %s1276_s12, %s25_s12   ;;  %s1205_s11 = sphi %s1274_s11, %s1424_s11   ;;  %s1201_s10 = sphi %s1272_s10, %s1423_s10  }
  0x12   : > { %p46_p6 = scmp.ge.s32.totalorder %s44_s0, 2  ;;  %p315_p7 = scmp.lt.s32.totalorder %s1209_s12, 3 }
  0x14   : > { %s1426_s0 = smov (%p46_p6, %s44_s0), 0  ;;  %p316_p8 = pnand %p1009_p5, %p315_p7 }
  0x15   : > { %p391_p9 = scmp.lt.s32.totalorder (!%p316_p8), %s1201_s10, 1  ;;  %v1212_v0 = vmov (!%p316_p8), 2   ;;  %v1213_v1 = vmov (!%p316_p8), 0   ;;  %v1214_v3 = vmov (!%p316_p8), 3   ;;  %v1215_v4 = vmov (!%p316_p8), 1   ;;  %v455_v7 = vld [vmem:[%s1416_s4] sm:$0xff] (!%p316_p8) }
  0x16   : > { %319 = sbr.rel (%p316_p8) target bundleno = 799 (0x31f), region = 36  ;;  %1143 = vset.pattern.permute.xlu1 (!%p316_p8), %v1212_v0  ;;  %1141 = vset.pattern.permute.xlu0 (!%p316_p8), %v1213_v1  ;;  %v1216_v5 = vmov (!%p316_p8), 4   ;;  %v1217_v6 = vmov (!%p316_p8), 5   ;;  %v1218_v8 = vmov (!%p316_p8), 6   ;;  %v1219_v9 = vmov (!%p316_p8), 7   ;;  %s1312_s23 = sld [smem:[#allocation6 + %s1201_s10]] (!%p316_p8) }
  0x17   : > { %vm450_vm0 = vcmask (!%p316_p8), 7168   ;;  %v1220_v10 = vmov (!%p316_p8), -1e+30   ;;  %v463_v35 = vlaneseq (!%p316_p8)  ;;  %vm1223_vm2 = vmmov (!%p316_p8), 0  }
  0x18   : > { %451 = vst.msk [vmem:[#allocation2] sm:$0xff] (!%p316_p8), %vm450_vm0, %v1220_v10 }
  0x19   : > { %v464_v47 = vand.u32 (!%p316_p8), 127, %v463_v35 }
  0x1c   : > { %v467_v48 = vstv (!%p316_p8), %s1312_s23 }
  0x1d   : > { %s1294_s13 = scalar_select %p391_p9, %s1201_s10, 1  ;;  %vm1323_vm1 = vcmp.lt.s32.totalorder %v464_v47, %v467_v48 }
  0x1f   : > { %s1297_s14 = sshll.u32 %s1294_s13, 3  ;;  %s1027_s27 = sshll.u32 %s1294_s13, 7 }
  0x20   : > { %s397_s17 = scalar_lea.vmem %s1413_s1, %s1297_s14  ;;  %s404_s22 = scalar_lea.vmem %s1414_s2, %s1297_s14 }
  0x21   : > { %v505_v2 = vld [vmem:[%s397_s17] sm:$0xff]  ;;  %s1331_s26 = scalar_lea.vmem %s1418_s6, %s1297_s14  ;;  %s1368_s30 = scalar_lea.vmem %s1415_s3, %s1027_s27 }
  0x22   : > { %508 = vperm.xlu1 %1143, %v505_v2   ;;  %472 = vperm.xlu0 %1141, %v505_v2   ;;  %v454_v11 = vld [vmem:[%s404_s22] sm:$0xff]  ;;  %v652_v48 = vld [vmem:[%s1368_s30 + $0x18] sm:$0xff]  ;;  %s438_s13 = scalar_lea.vmem %s1419_s7, %s1297_s14  ;;  %s445_s17 = scalar_lea.vmem %s1420_s8, %s1297_s14 }
  0x23   : > { %s421_s20 = scalar_lea.vmem %s1417_s5, %s1297_s14 }
  0x26   : > { %1144 = vset.pattern.permute.xlu1 %v1214_v3  ;;  %1142 = vset.pattern.permute.xlu0 %v1215_v4 }
  0x27   : > { %527 = vperm.xlu1 %1144, %v505_v2   ;;  %489 = vperm.xlu0 %1142, %v505_v2  }
  0x2b   : > { %1145 = vset.pattern.permute.xlu1 %v1216_v5  ;;  %1146 = vset.pattern.permute.xlu0 %v1217_v6 }
  0x2c   : > { %546 = vperm.xlu1 %1145, %v505_v2   ;;  %565 = vperm.xlu0 %1146, %v505_v2  }
  0x30   : > { %1147 = vset.pattern.permute.xlu1 %v1218_v8  ;;  %1149 = vset.pattern.permute.xlu0 %v1213_v1 }
  0x31   : > { %584 = vperm.xlu1 %1147, %v505_v2   ;;  %458 = vperm.xlu0 %1149, %v455_v7  }
  0x35   : > { %1148 = vset.pattern.permute.xlu1 %v1219_v9 }
  0x36   : > { %603 = vperm.xlu1 %1148, %v505_v2  }
  0x3a   : > { %1150 = vset.pattern.permute.xlu1 %v1213_v1 }
  0xa1   : > { %v509_v12 = vpop.permute.xlu1 %508  ;;  %v473_v13 = vpop.permute.xlu0 %472 }
  0xa2   : > { %v511_v14 = vadd.f32 %v509_v12, %v454_v11  ;;  %v475_v15 = vadd.f32 %v473_v13, %v454_v11 }
  0xa4   : > { %1151 = vtanh.f32 %v475_v15 }
  0xa5   : > { %1153 = vtanh.f32 %v511_v14 }
  0xa6   : > { %v528_v16 = vpop.permute.xlu1 %527  ;;  %v490_v17 = vpop.permute.xlu0 %489 }
  0xa7   : > { %v530_v18 = vadd.f32 %v528_v16, %v454_v11  ;;  %v492_v19 = vadd.f32 %v490_v17, %v454_v11 }
  0xa9   : > { %1155 = vtanh.f32 %v530_v18 }
  0xaa   : > { %1157 = vtanh.f32 %v492_v19 }
  0xab   : > { %v547_v20 = vpop.permute.xlu1 %546  ;;  %v566_v21 = vpop.permute.xlu0 %565 }
  0xac   : > { %v549_v22 = vadd.f32 %v547_v20, %v454_v11  ;;  %v568_v23 = vadd.f32 %v566_v21, %v454_v11 }
  0xae   : > { %1159 = vtanh.f32 %v549_v22  ;;  %v1152_v24 = vpop.eup %1151 }
  0xaf   : > { %1161 = vtanh.f32 %v568_v23  ;;  %v1154_v25 = vpop.eup %1153 }
  0xb0   : > { %v585_v26 = vpop.permute.xlu1 %584  ;;  %v1314_v27 = vpop.permute.xlu0 %458 }
  0xb1   : > { %v587_v28 = vadd.f32 %v585_v26, %v454_v11  ;;  %v477_v29 = vmul.f32 %v1152_v24, %v1314_v27  ;;  %v513_v30 = vmul.f32 %v1154_v25, %v1314_v27 }
  0xb3   : > { %v1156_v31 = vpop.eup %1155  ;;  %1163 = vtanh.f32 %v587_v28  ;;  %v478_v32 = vrot.slane %v477_v29, 4  ;;  %v514_v33 = vrot.slane %v513_v30, 4 }
  0xb4   : > { %v1158_v34 = vpop.eup %1157  ;;  %v532_v36 = vmul.f32 %v1156_v31, %v1314_v27 }
  0xb5   : > { %v479_v37 = vadd.f32 %v478_v32, %v477_v29  ;;  %v494_v38 = vmul.f32 %v1158_v34, %v1314_v27  ;;  %v515_v39 = vadd.f32 %v514_v33, %v513_v30  ;;  %v604_v40 = vpop.permute.xlu1 %603 }
  0xb6   : > { %v533_v41 = vrot.slane %v532_v36, 4  ;;  %v606_v42 = vadd.f32 %v604_v40, %v454_v11 }
  0xb7   : > { %v480_v43 = vrot.slane %v479_v37, 2  ;;  %v495_v44 = vrot.slane %v494_v38, 4  ;;  %v516_v45 = vrot.slane %v515_v39, 2 }
  0xb8   : > { %v1160_v46 = vpop.eup %1159  ;;  %v534_v49 = vadd.f32 %v533_v41, %v532_v36  ;;  %1165 = vtanh.f32 %v606_v42  ;;  %v1221_v42 = vmov 0.0  }
  0xb9   : > { %v1162_v50 = vpop.eup %1161  ;;  %v481_v51 = vadd.f32 %v480_v43, %v479_v37  ;;  %v496_v52 = vadd.f32 %v495_v44, %v494_v38  ;;  %v517_v53 = vadd.f32 %v516_v45, %v515_v39  ;;  %v551_v54 = vmul.f32 %v1160_v46, %v1314_v27  ;;  %452 = vst.msk [vmem:[#allocation3] sm:$0xff] %vm450_vm0, %v1221_v42  ;;  %v649_v43 = vld [vmem:[%s1368_s30] sm:$0xff]  ;;  %v650_v44 = vld [vmem:[%s1368_s30 + $0x8] sm:$0xff]  ;;  %v651_v45 = vld [vmem:[%s1368_s30 + $0x10] sm:$0xff] }
  0xba   : > { %v535_v55 = vrot.slane %v534_v49, 2  ;;  %v570_v56 = vmul.f32 %v1162_v50, %v1314_v27  ;;  %v1222_v46 = vmov 0.0|0.0   ;;  %v1081_v47 = vpack.c.bf16 %v650_v44, %v649_v43  ;;  %v653_v50 = vld [vmem:[%s1368_s30 + $0x20] sm:$0xff]  ;;  %1077 = vmatprep.mubr.msk.f32.mxu0 %vm1223_vm2, %v1221_v42 }
  0xbb   : > { %v482_v57 = vrot.slane %v481_v51, 1  ;;  %v497_v58 = vrot.slane %v496_v52, 2  ;;  %v518_v59 = vrot.slane %v517_v53, 1  ;;  %v552_v60 = vrot.slane %v551_v54, 4  ;;  %1080 = vmatprep.subr.bf16.mxu0 %v1222_v46 }
  0xbc   : > { %v536_v62 = vadd.f32 %v535_v55, %v534_v49  ;;  %v571_v63 = vrot.slane %v570_v56, 4  ;;  %1082 = vmatpush3.bf16.msra.mxu0 %v1081_v47  ;;  %v1084_v49 = vpack.c.bf16 %v652_v48, %v651_v45 }
  0xbd   : > { %v1164_v0 = vpop.eup %1163  ;;  %v483_v1 = vadd.f32 %v482_v57, %v481_v51  ;;  %v498_v2 = vadd.f32 %v497_v58, %v496_v52  ;;  %v519_v3 = vadd.f32 %v518_v59, %v517_v53  ;;  %v553_v4 = vadd.f32 %v552_v60, %v551_v54  ;;  %1083 = vmatprep.subr.bf16.mxu0 %v1222_v46  ;;  %v654_v51 = vld [vmem:[%s1368_s30 + $0x28] sm:$0xff]  ;;  %v655_v53 = vld [vmem:[%s1368_s30 + $0x30] sm:$0xff]  ;;  %v656_v54 = vld [vmem:[%s1368_s30 + $0x38] sm:$0xff] }
  0xbe   : > { %v537_v5 = vrot.slane %v536_v62, 1  ;;  %v572_v6 = vadd.f32 %v571_v63, %v570_v56  ;;  %v589_v7 = vmul.f32 %v1164_v0, %v1314_v27  ;;  %v1087_v52 = vpack.c.bf16 %v654_v51, %v653_v50  ;;  %v620_v56 = vld [vmem:[#allocation2] sm:$0xff]  ;;  %v658_v59 = vld [vmem:[%s1368_s30 + $0x48] sm:$0xff]  ;;  %v659_v63 = vld [vmem:[%s1368_s30 + $0x50] sm:$0xff] }
  0xbf   : > { %v484_v8 = vsel %vm1323_vm1, %v483_v1, -1000000.0  ;;  %v499_v9 = vrot.slane %v498_v2, 1  ;;  %v520_v10 = vsel %vm1323_vm1, %v519_v3, -1000000.0  ;;  %v554_v11 = vrot.slane %v553_v4, 2 }
  0xc0   : > { %v538_v12 = vadd.f32 %v537_v5, %v536_v62  ;;  %v573_v13 = vrot.slane %v572_v6, 2  ;;  %v590_v14 = vrot.slane %v589_v7, 4  ;;  %485 = vst [vmem:[%s1331_s26] sm:$0x1] %v484_v8  ;;  %1019 = vst [vmem:[%s1331_s26 + $0x2] sm:$0x1] %v520_v10  ;;  %1085 = vmatpush3.bf16.msra.mxu0 %v1084_v49  ;;  %v1090_v55 = vpack.c.bf16 %v656_v54, %v655_v53  ;;  %v657_v58 = vld [vmem:[%s1368_s30 + $0x40] sm:$0xff] }
  0xc1   : > { %v500_v15 = vadd.f32 %v499_v9, %v498_v2  ;;  %v555_v16 = vadd.f32 %v554_v11, %v553_v4  ;;  %1086 = vmatprep.subr.bf16.mxu0 %v1222_v46  ;;  %v1093_v61 = vpack.c.bf16 %v658_v59, %v657_v58  ;;  %v660_v0 = vld [vmem:[%s1368_s30 + $0x58] sm:$0xff]  ;;  %v661_v3 = vld [vmem:[%s1368_s30 + $0x60] sm:$0xff]  ;;  %v662_v4 = vld [vmem:[%s1368_s30 + $0x68] sm:$0xff] }
  0xc2   : > { %v1166_v17 = vpop.eup %1165  ;;  %v539_v18 = vsel %vm1323_vm1, %v538_v12, -1000000.0  ;;  %v574_v19 = vadd.f32 %v573_v13, %v572_v6  ;;  %v591_v20 = vadd.f32 %v590_v14, %v589_v7  ;;  %v1096_v2 = vpack.c.bf16 %v660_v0, %v659_v63  ;;  %v663_v6 = vld [vmem:[%s1368_s30 + $0x70] sm:$0xff]  ;;  %v664_v7 = vld [vmem:[%s1368_s30 + $0x78] sm:$0xff] }
  0xc3   : > { %v501_v21 = vsel %vm1323_vm1, %v500_v15, -1000000.0  ;;  %v556_v22 = vrot.slane %v555_v16, 1  ;;  %v608_v23 = vmul.f32 %v1166_v17, %v1314_v27  ;;  %1020 = vst [vmem:[%s1331_s26 + $0x3] sm:$0x1] %v539_v18  ;;  %v1099_v5 = vpack.c.bf16 %v662_v4, %v661_v3  ;;  %v635_v15 = vld [vmem:[#allocation3] sm:$0xff] }
  0xc4   : > { %v575_v24 = vrot.slane %v574_v19, 1  ;;  %v592_v25 = vrot.slane %v591_v20, 2  ;;  %1018 = vst [vmem:[%s1331_s26 + $0x1] sm:$0x1] %v501_v21  ;;  %1088 = vmatpush3.bf16.msra.mxu0 %v1087_v52  ;;  %v1102_v9 = vpack.c.bf16 %v664_v7, %v663_v6 }
  0xc5   : > { %v557_v26 = vadd.f32 %v556_v22, %v555_v16  ;;  %v609_v28 = vrot.slane %v608_v23, 4  ;;  %1089 = vmatprep.subr.bf16.mxu0 %v1222_v46 }
  0xc6   : > { %v576_v29 = vadd.f32 %v575_v24, %v574_v19  ;;  %v593_v30 = vadd.f32 %v592_v25, %v591_v20 }
  0xc7   : > { %v558_v31 = vsel %vm1323_vm1, %v557_v26, -1000000.0  ;;  %v610_v32 = vadd.f32 %v609_v28, %v608_v23 }
  0xc8   : > { %v577_v33 = vsel %vm1323_vm1, %v576_v29, -1000000.0  ;;  %v594_v34 = vrot.slane %v593_v30, 1  ;;  %1021 = vst [vmem:[%s1331_s26 + $0x4] sm:$0x1] %v558_v31  ;;  %1091 = vmatpush3.bf16.msra.mxu0 %v1090_v55 }
  0xc9   : > { %v611_v27 = vrot.slane %v610_v32, 2  ;;  %1022 = vst [vmem:[%s1331_s26 + $0x5] sm:$0x1] %v577_v33  ;;  %1092 = vmatprep.subr.bf16.mxu0 %v1222_v46 }
  0xca   : > { %v595_v35 = vadd.f32 %v594_v34, %v593_v30 }
  0xcb   : > { %v612_v36 = vadd.f32 %v611_v27, %v610_v32 }
  0xcc   : > { %v596_v37 = vsel %vm1323_vm1, %v595_v35, -1000000.0  ;;  %1094 = vmatpush3.bf16.msra.mxu0 %v1093_v61 }
  0xcd   : > { %v613_v38 = vrot.slane %v612_v36, 1  ;;  %1023 = vst [vmem:[%s1331_s26 + $0x6] sm:$0x1] %v596_v37  ;;  %1095 = vmatprep.subr.bf16.mxu0 %v1222_v46 }
  0xcf   : > { %v614_v39 = vadd.f32 %v613_v38, %v612_v36 }
  0xd0   : > { %1097 = vmatpush3.bf16.msra.mxu0 %v1096_v2 }
  0xd1   : > { %v615_v40 = vsel %vm1323_vm1, %v614_v39, -1000000.0  ;;  %1098 = vmatprep.subr.bf16.mxu0 %v1222_v46 }
  0xd2   : > { %1024 = vst [vmem:[%s1331_s26 + $0x7] sm:$0x1] %v615_v40 }
  0xd4   : > { %1100 = vmatpush3.bf16.msra.mxu0 %v1099_v5 }
  0xd5   : > { %1101 = vmatprep.subr.bf16.mxu0 %v1222_v46 }
  0xd8   : > { %1103 = vmatpush3.bf16.msra.mxu0 %v1102_v9 }
  0xd9   : > { %v1360_v41 = vld [vmem:[%s1331_s26] sm:$0xff] }
  0xda   : > { %621 = vmax.xlane.f32.xlu1 %v1360_v41 }
 0x167   : > { %v622_v57 = vpop.xlane.xlu1 %621 }
 0x168   : > { %v623_v60 = vmax.f32 %v620_v56, %v622_v57 }
 0x16a   : > { %v624_v62 = vsub.f32 %v620_v56, %v623_v60  ;;  %737 = vst.msk [vmem:[#allocation2] sm:$0xff] %vm450_vm0, %v623_v60  ;;  %629 = vperm.xlu0 %1149, %v623_v60  }
 0x16c   : > { %v625_v1 = vmul.f32 1.442695, %v624_v62 }
 0x16e   : > { %1167 = vpow2.f32 %v625_v1 }
 0x171   : > { %v751_v8 = vld [vmem:[#allocation2] sm:$0xff] }
 0x172   : > { %752 = vst.msk [vmem:[%s438_s13] sm:$0xff] %vm450_vm0, %v751_v8 }
 0x178   : > { %v1168_v10 = vpop.eup %1167 }
 0x179   : > { %645 = vperm.xlu1 %1150, %v1168_v10   ;;  %v636_v16 = vmul.f32 %v1168_v10, %v635_v15 }
 0x1e9   : > { %v630_v11 = vpop.permute.xlu0 %629 }
 0x1ea   : > { %v632_v12 = vsub.f32 %v1360_v41, %v630_v11 }
 0x1ec   : > { %v633_v13 = vmul.f32 1.442695, %v632_v12 }
 0x1ee   : > { %1169 = vpow2.f32 %v633_v13 }
 0x1f8   : > { %v1170_v14 = vpop.eup %1169  ;;  %v646_v23 = vpop.permute.xlu1 %645 }
 0x1f9   : > { %637 = vadd.xlane.f32.xlu0 %v1170_v14  ;;  %1078 = vmatmul.mubr.f32.vlgmr.msra.gmra.mrb[0].mxu0 %v1170_v14  ;;  %v648_v24 = vmul.f32 0.0, %v646_v23 }
 0x286   : > { %v638_v17 = vpop.xlane.xlu0 %637 }
 0x287   : > { %v639_v18 = vadd.f32 %v638_v17, %v636_v16 }
 0x289   : > { %641 = vst.msk [vmem:[#allocation3] sm:$0xff] %vm450_vm0, %v639_v18 }
 0x290   : > { %v753_v19 = vld [vmem:[#allocation3] sm:$0xff] }
 0x291   : > { %754 = vst.msk [vmem:[%s445_s17] sm:$0xff] %vm450_vm0, %v753_v19  ;;  %1171 = vrcp.f32 %v753_v19 }
 0x29b   : > { %v1172_v20 = vpop.eup %1171 }
 0x29c   : > { %746 = vperm.xlu0 %1149, %v1172_v20  }
 0x2cc   : > { %v731_v21 = vpop.f32.mrb[0].mxu0 }
 0x2cd   : > { %v1079_v22 = vpop.f32.mrb[1].mxu0  ;;  %v735_v25 = vadd.f32 %v731_v21, %v648_v24 }
 0x31b   : > { %v747_v26 = vpop.permute.xlu0 %746 }
 0x31c   : > { %v749_v28 = vmul.f32 %v747_v26, %v735_v25 }
 0x31e   : > { %750 = vst [vmem:[%s421_s20] sm:$0xff] %v749_v28 }
 0x31f PF: > { %s25_s12 = sadd.s32 1, %s1209_s12   ;;  %s1423_s10 = smov %s1205_s11 }
 0x320   : > { %p22_p10 = scmp.ge.s32.totalorder %s25_s12, 4   ;;  %s1424_s11 = smov %s1426_s0 }
 0x322   :  { %24 = sbr.rel (!%p22_p10) target bundleno = 17 (0x11), region = 123 }

</bundles_post_ra>
